<compile_context>
chip_gen: v6e
topology: v6e:2x2x1
jax: 0.10.0
libtpu: 0.0.40
codegen_flags: <defaults>
</compile_context>

<pallas_src>
import jax
import jax.numpy as jnp
from jax.experimental import pallas as pl
from jax.experimental.pallas import tpu as pltpu


def _cdiv(a, b):
    return -(-a // b)


# ------------------------------- kernels ------------------------------------


def _se_kernel_flat(x_ref, sum_ref, w1_ref, w2_ref, exp_ref, o_ref):
    """Lane-dense primary path.  x_ref block: [Bt, C*T] (C*T on lanes).

    sum_ref: [C*T, C] 0/1 operator summing each channel's T samples.
    exp_ref: [C, C*T] 0/1 operator broadcasting each channel gate over T.
    Rows (batch elements) are fully independent, so a clipped boundary block
    (garbage rows) cannot contaminate valid rows.
    """
    xb = x_ref[...]                                    # single VMEM read of the block
    inv_t = 1.0 / (x_ref.shape[1] // sum_ref.shape[1])  # 1 / T (exact f32 scale)

    # squeeze: time-mean via one MXU dot (native-dtype inputs, f32 accumulation)
    # -> no block-sized f32 temporary, MXU is otherwise idle here.
    y = jnp.dot(xb, sum_ref[...], preferred_element_type=jnp.float32) * inv_t  # [Bt, C]

    # excite: FC -> ReLU -> FC -> sigmoid on the tiny [Bt, C] path, in f32.
    h = jnp.maximum(
        jnp.dot(y, w1_ref[...], preferred_element_type=jnp.float32), 0.0)      # [Bt, H]
    s = jax.nn.sigmoid(
        jnp.dot(h, w2_ref[...], preferred_element_type=jnp.float32))           # [Bt, C]

    # expand the channel gates back to [Bt, C*T] on the MXU (one-hot operator,
    # exact in any dtype) and scale in the input dtype -> lane-dense store.
    s_exp = jnp.dot(s.astype(xb.dtype), exp_ref[...],
                    preferred_element_type=xb.dtype)                           # [Bt, C*T]
    o_ref[...] = xb * s_exp


def _se_kernel_nct(x_ref, w1_ref, w2_ref, o_ref):
    """Fallback path for very large C*T (when the [C*T, C] operator matrices of
    the flat path would not fit VMEM).  x_ref block: [Bt, C, T]."""
    xb = x_ref[...]
    y = jnp.sum(xb, axis=-1, dtype=jnp.float32) * (1.0 / x_ref.shape[-1])      # [Bt, C]
    h = jnp.maximum(
        jnp.dot(y, w1_ref[...], preferred_element_type=jnp.float32), 0.0)
    s = jax.nn.sigmoid(
        jnp.dot(h, w2_ref[...], preferred_element_type=jnp.float32))
    o_ref[...] = xb * s.astype(o_ref.dtype)[:, :, None]


# ------------------------------- tiling -------------------------------------


def _vmem_capacity_bytes():
    try:
        cap = getattr(pltpu.get_tpu_info(), "vmem_capacity_bytes", None)
        if cap:
            return int(cap)
    except Exception:
        pass
    return 64 << 20  # conservative: v7x has 64 MiB VMEM per TensorCore


def _block_budget_bytes(vmem_cap):
    # 2 input + 2 output double buffers per x block; leave headroom for the
    # small weight/operator buffers and compiler scratch.  4-8 MiB blocks sit
    # at ~85%+ of the HBM roofline while staying well inside v7x's 64 MiB.
    return max(1 << 20, min(8 << 20, (vmem_cap - (16 << 20)) // 4))


def _pick_batch_tile(B, row_bytes, block_budget):
    """Rows (batch elements) per grid step.

    Returns Bt with Bt == B or Bt % 8 == 0 (sublane rule for the 2-D flat
    blocks), Bt * row_bytes <= block_budget when possible, preferring an even
    grid of >= 4 steps without shrinking blocks below ~1 MiB.
    """
    max_rows = max(1, block_budget // max(row_bytes, 1))
    if max_rows >= B:
        # Whole batch fits in one block; split in two when each half is still
        # >= ~1 MiB so both v7x TensorCores get work.
        half = ((B // 2 + 7) // 8) * 8
        if 0 < half < B and half * row_bytes >= (1 << 20):
            return half
        return B
    bt = (max_rows // 8) * 8
    if bt == 0:
        # TODO(synk): a single [1, C*T] row exceeds the block budget; a
        # two-pass (T-tiled reduce, then scale) kernel would be needed here.
        return min(B, 8)
    steps = _cdiv(B, bt)
    if steps % 2 or steps < 4:
        target = max(4, steps + (steps % 2))
        cand = ((_cdiv(B, target) + 7) // 8) * 8
        if cand >= 8 and cand * row_bytes >= (1 << 20):
            bt = cand
    return bt


# ------------------------------- wrapper ------------------------------------


def squeeze_excite_block(x, w1, w2):
    """x: [B, C, T]; w1: [C, H]; w2: [H, C] (pre-transposed nn.Linear weights, no bias)."""
    B, C, T = x.shape
    H = w1.shape[1]
    P = C * T
    itemsize = x.dtype.itemsize

    vmem_cap = _vmem_capacity_bytes()
    budget = _block_budget_bytes(vmem_cap)
    row_bytes = P * itemsize
    Bt = _pick_batch_tile(B, row_bytes, budget)
    grid = (_cdiv(B, Bt),)
    block_bytes = Bt * row_bytes
    w_bytes = (w1.size + w2.size) * w1.dtype.itemsize

    # TODO(synk): on v7x, sweep pipeline_mode=pl.Buffered(3) on the x/out specs
    # once block size is final (per-step HBM time is short at 3.2 TB/s).

    op_bytes = P * C * itemsize  # one [C*T, C] 0/1 operator matrix
    if op_bytes <= (2 << 20):
        # ---------------- lane-dense flat path (primary) ----------------
        x_flat = x.reshape(B, P)  # free view of the contiguous NCT array
        eye = jnp.eye(C, dtype=x.dtype)
        sum_mat = jnp.repeat(eye, T, axis=0)   # [C*T, C] : time-sum operator
        exp_mat = jnp.repeat(eye, T, axis=1)   # [C, C*T] : gate-broadcast operator
        aux_bytes = 2 * op_bytes + w_bytes
        vmem_limit = int(min(
            vmem_cap, max(16 << 20, 4 * block_bytes + 2 * aux_bytes + (4 << 20))))
        out_flat = pl.pallas_call(
            _se_kernel_flat,
            out_shape=jax.ShapeDtypeStruct((B, P), x.dtype),
            grid_spec=pltpu.PrefetchScalarGridSpec(
                num_scalar_prefetch=0,
                grid=grid,
                in_specs=[
                    pl.BlockSpec((Bt, P), lambda b: (b, 0)),
                    # Constant index maps -> weights/operators DMA'd once.
                    pl.BlockSpec((P, C), lambda b: (0, 0)),
                    pl.BlockSpec((C, H), lambda b: (0, 0)),
                    pl.BlockSpec((H, C), lambda b: (0, 0)),
                    pl.BlockSpec((C, P), lambda b: (0, 0)),
                ],
                out_specs=pl.BlockSpec((Bt, P), lambda b: (b, 0)),
            ),
            compiler_params=pltpu.CompilerParams(
                dimension_semantics=("parallel",),
                vmem_limit_bytes=vmem_limit),
        )(x_flat, sum_mat, w1, w2, exp_mat)
        return out_flat.reshape(B, C, T)

    # ---------------- NCT fallback for very large C*T ----------------
    vmem_limit = int(min(
        vmem_cap, max(16 << 20, 4 * block_bytes + 2 * w_bytes + (4 << 20))))
    return pl.pallas_call(
        _se_kernel_nct,
        out_shape=jax.ShapeDtypeStruct((B, C, T), x.dtype),
        grid_spec=pltpu.PrefetchScalarGridSpec(
            num_scalar_prefetch=0,
            grid=grid,
            in_specs=[
                pl.BlockSpec((Bt, C, T), lambda b: (b, 0, 0)),
                pl.BlockSpec((C, H), lambda b: (0, 0)),
                pl.BlockSpec((H, C), lambda b: (0, 0)),
            ],
            out_specs=pl.BlockSpec((Bt, C, T), lambda b: (b, 0, 0)),
        ),
        compiler_params=pltpu.CompilerParams(
            dimension_semantics=("parallel",),
            vmem_limit_bytes=vmem_limit),
    )(x, w1, w2)


def se_block_reference(x, w1, w2):
    """Pure-JAX reference matching the PyTorch forward."""
    y = jnp.mean(x, axis=-1)                     # [B, C]
    h = jnp.maximum(y @ w1, 0.0)                 # [B, H]
    s = jax.nn.sigmoid(h @ w2)                   # [B, C]
    return x * s[:, :, None]


if __name__ == "__main__":
    # Small shapes consistent with the module: [batch, channel, time_steps]
    B, C, T = 2, 32, 16
    reduction = 4
    H = C // reduction

    key = jax.random.PRNGKey(0)
    kx, k1, k2 = jax.random.split(key, 3)

    x = jax.random.normal(kx, (B, C, T), dtype=jnp.float32)
    # nn.Linear(C, H, bias=False).weight is [H, C]; store its transpose [C, H].
    w1 = jax.random.normal(k1, (C, H), dtype=jnp.float32) * 0.1
    # nn.Linear(H, C, bias=False).weight is [C, H]; store its transpose [H, C].
    w2 = jax.random.normal(k2, (H, C), dtype=jnp.float32) * 0.1

    out = jax.block_until_ready(squeeze_excite_block(x, w1, w2))
    ref = se_block_reference(x, w1, w2)

    assert out.shape == (B, C, T)
    assert jnp.allclose(out, ref, atol=2e-5, rtol=2e-5), "mismatch vs reference"

    print("KERNEL_OK")
</pallas_src>

<mosaic_0001>
module attributes {stable_mosaic.version = 11 : i64} {
  func.func @_se_kernel_flat(%arg0: i32, %arg1: memref<2x512xf32, #tpu.memory_space<vmem>>, %arg2: memref<512x32xf32, #tpu.memory_space<vmem>>, %arg3: memref<32x8xf32, #tpu.memory_space<vmem>>, %arg4: memref<8x32xf32, #tpu.memory_space<vmem>>, %arg5: memref<32x512xf32, #tpu.memory_space<vmem>>, %arg6: memref<2x512xf32, #tpu.memory_space<vmem>>) attributes {dimension_semantics = [#tpu.dimension_semantics<parallel>], iteration_bounds = array<i64: 1>, scalar_prefetch = 0 : i64, scratch_operands = 0 : i64, tpu.core_type = #tpu.core_type<tc>, window_params = [{transform_indices = @transform_0, window_bounds = array<i64: 2, 512>}, {pipeline_mode = #tpu.pipeline_mode<synchronous>, transform_indices = @transform_1, window_bounds = array<i64: 512, 32>}, {pipeline_mode = #tpu.pipeline_mode<synchronous>, transform_indices = @transform_2, window_bounds = array<i64: 32, 8>}, {pipeline_mode = #tpu.pipeline_mode<synchronous>, transform_indices = @transform_3, window_bounds = array<i64: 8, 32>}, {pipeline_mode = #tpu.pipeline_mode<synchronous>, transform_indices = @transform_4, window_bounds = array<i64: 32, 512>}, {transform_indices = @transform_5, window_bounds = array<i64: 2, 512>}]} {
    %c0 = arith.constant 0 : index
    %c0_0 = arith.constant 0 : index
    %0 = vector.load %arg1[%c0, %c0_0] : memref<2x512xf32, #tpu.memory_space<vmem>>, vector<2x512xf32>
    %c0_1 = arith.constant 0 : index
    %c0_2 = arith.constant 0 : index
    %1 = vector.load %arg2[%c0_1, %c0_2] : memref<512x32xf32, #tpu.memory_space<vmem>>, vector<512x32xf32>
    %cst = arith.constant dense<0.000000e+00> : vector<2x32xf32>
    %2 = tpu.matmul %0, %1, %cst {dimension_numbers = #tpu.dot_dimension_numbers<[1], [0], [0], [1], [0, 0, 1, 1], [], []>} : vector<2x512xf32>, vector<512x32xf32>, vector<2x32xf32> -> vector<2x32xf32>
    %cst_3 = arith.constant 6.250000e-02 : f32
    %3 = vector.broadcast %cst_3 : f32 to vector<2x32xf32>
    %4 = arith.mulf %2, %3 : vector<2x32xf32>
    %c0_4 = arith.constant 0 : index
    %c0_5 = arith.constant 0 : index
    %5 = vector.load %arg3[%c0_4, %c0_5] : memref<32x8xf32, #tpu.memory_space<vmem>>, vector<32x8xf32>
    %cst_6 = arith.constant dense<0.000000e+00> : vector<2x8xf32>
    %6 = tpu.matmul %4, %5, %cst_6 {dimension_numbers = #tpu.dot_dimension_numbers<[1], [0], [0], [1], [0, 0, 1, 1], [], []>} : vector<2x32xf32>, vector<32x8xf32>, vector<2x8xf32> -> vector<2x8xf32>
    %cst_7 = arith.constant 0.000000e+00 : f32
    %7 = vector.broadcast %cst_7 : f32 to vector<2x8xf32>
    %8 = arith.maximumf %6, %7 : vector<2x8xf32>
    %c0_8 = arith.constant 0 : index
    %c0_9 = arith.constant 0 : index
    %9 = vector.load %arg4[%c0_8, %c0_9] : memref<8x32xf32, #tpu.memory_space<vmem>>, vector<8x32xf32>
    %cst_10 = arith.constant dense<0.000000e+00> : vector<2x32xf32>
    %10 = tpu.matmul %8, %9, %cst_10 {dimension_numbers = #tpu.dot_dimension_numbers<[1], [0], [0], [1], [0, 0, 1, 1], [], []>} : vector<2x8xf32>, vector<8x32xf32>, vector<2x32xf32> -> vector<2x32xf32>
    %11 = arith.negf %10 : vector<2x32xf32>
    %12 = math.exp %11 : vector<2x32xf32>
    %cst_11 = arith.constant 1.000000e+00 : f32
    %13 = vector.broadcast %cst_11 : f32 to vector<2x32xf32>
    %14 = arith.addf %13, %12 : vector<2x32xf32>
    %15 = arith.divf %13, %14 : vector<2x32xf32>
    %c0_12 = arith.constant 0 : index
    %c0_13 = arith.constant 0 : index
    %16 = vector.load %arg5[%c0_12, %c0_13] : memref<32x512xf32, #tpu.memory_space<vmem>>, vector<32x512xf32>
    %cst_14 = arith.constant dense<0.000000e+00> : vector<2x512xf32>
    %17 = tpu.matmul %15, %16, %cst_14 {dimension_numbers = #tpu.dot_dimension_numbers<[1], [0], [0], [1], [0, 0, 1, 1], [], []>} : vector<2x32xf32>, vector<32x512xf32>, vector<2x512xf32> -> vector<2x512xf32>
    %18 = arith.mulf %0, %17 : vector<2x512xf32>
    %c0_15 = arith.constant 0 : index
    %c0_16 = arith.constant 0 : index
    %19 = vector.load %arg6[%c0_15, %c0_16] : memref<2x512xf32, #tpu.memory_space<vmem>>, vector<2x512xf32>
    tpu.vector_store %arg6[%c0_15, %c0_16], %18 {strides = array<i32>} : memref<2x512xf32, #tpu.memory_space<vmem>>, vector<2x512xf32>,
    return
  }
  func.func @transform_0(%arg0: i32) -> (i32, i32) {
    %c0_i32 = arith.constant 0 : i32
    %c0_i32_0 = arith.constant 0 : i32
    return %arg0, %c0_i32 : i32, i32
  }
  func.func @transform_1(%arg0: i32) -> (i32, i32) {
    %c0_i32 = arith.constant 0 : i32
    %c0_i32_0 = arith.constant 0 : i32
    %c0_i32_1 = arith.constant 0 : i32
    return %c0_i32, %c0_i32_0 : i32, i32
  }
  func.func @transform_2(%arg0: i32) -> (i32, i32) {
    %c0_i32 = arith.constant 0 : i32
    %c0_i32_0 = arith.constant 0 : i32
    %c0_i32_1 = arith.constant 0 : i32
    return %c0_i32, %c0_i32_0 : i32, i32
  }
  func.func @transform_3(%arg0: i32) -> (i32, i32) {
    %c0_i32 = arith.constant 0 : i32
    %c0_i32_0 = arith.constant 0 : i32
    %c0_i32_1 = arith.constant 0 : i32
    return %c0_i32, %c0_i32_0 : i32, i32
  }
  func.func @transform_4(%arg0: i32) -> (i32, i32) {
    %c0_i32 = arith.constant 0 : i32
    %c0_i32_0 = arith.constant 0 : i32
    %c0_i32_1 = arith.constant 0 : i32
    return %c0_i32, %c0_i32_0 : i32, i32
  }
  func.func @transform_5(%arg0: i32) -> (i32, i32) {
    %c0_i32 = arith.constant 0 : i32
    %c0_i32_0 = arith.constant 0 : i32
    return %arg0, %c0_i32 : i32, i32
  }
}

</mosaic_0001>

<bundles_post_ra>
// kernel: tpu_custom_call.1
= control target key start
LH: loop header
LB: loop body
LE: loop exit
PB: predicated region body
PF: predicated region fallthrough
CT: control target
= control target key end

     0   :  { %v737_v30 = vmov 1983009808   ;;  %v91_v32 = vlaneseq  ;;  %s1047_s0 = inlined_call_operand.vmem [shape: f32[2,512], index: 0, kind: input, shape index: {}]   ;;  %s1048_s1 = inlined_call_operand.vmem [shape: f32[512,32], index: 1, kind: input, shape index: {}]   ;;  %s1049_s2 = inlined_call_operand.vmem [shape: f32[32,8], index: 2, kind: input, shape index: {}]   ;;  %s1050_s3 = inlined_call_operand.vmem [shape: f32[8,32], index: 3, kind: input, shape index: {}]   ;;  %s1051_s4 = inlined_call_operand.vmem [shape: f32[32,512], index: 4, kind: input, shape index: {}]   ;;  %s1052_s5 = inlined_call_operand.hbm [shape: f32[2,512], index: 5, kind: output, shape index: {}]  }
   0x1   :  { %v53_v0 = vld [vmem:[%s1048_s1 + $0xf8] sm:$0xff]  ;;  %v52_v4 = vld [vmem:[%s1048_s1 + $0xf0] sm:$0xff]  ;;  %v51_v8 = vld [vmem:[%s1048_s1 + $0xe8] sm:$0xff]  ;;  %v89_v31 = vunpack.c.l.s4 %v737_v30 }
   0x2   :  { %v85_v1 = vld [vmem:[%s1048_s1 + $0x1f8] sm:$0xff]  ;;  %613 = vmatprep.subr.mxu0 %v53_v0  ;;  %v84_v5 = vld [vmem:[%s1048_s1 + $0x1f0] sm:$0xff]  ;;  %v83_v9 = vld [vmem:[%s1048_s1 + $0x1e8] sm:$0xff]  ;;  %v92_v42 = vshrl.u32 %v91_v32, 7 }
   0x3   :  { %v37_v2 = vld [vmem:[%s1048_s1 + $0x78] sm:$0xff]  ;;  %648 = vmatprep.subr.mxu1 %v85_v1  ;;  %v36_v6 = vld [vmem:[%s1048_s1 + $0x70] sm:$0xff]  ;;  %v35_v10 = vld [vmem:[%s1048_s1 + $0x68] sm:$0xff]  ;;  %v90_v41 = vunpack.c.0.s8 %v89_v31 }
   0x4   :  { %v69_v3 = vld [vmem:[%s1048_s1 + $0x178] sm:$0xff]  ;;  %614 = vmatpush3.msra.mxu0 %v37_v2  ;;  %v68_v7 = vld [vmem:[%s1048_s1 + $0x170] sm:$0xff]  ;;  %v67_v11 = vld [vmem:[%s1048_s1 + $0x168] sm:$0xff] }
   0x5   :  { %649 = vmatpush3.msra.mxu1 %v69_v3  ;;  %615 = vmatprep.subr.mxu0 %v52_v4  ;;  %v50_v12 = vld [vmem:[%s1048_s1 + $0xe0] sm:$0xff]  ;;  %v49_v16 = vld [vmem:[%s1048_s1 + $0xd8] sm:$0xff]  ;;  %v48_v20 = vld [vmem:[%s1048_s1 + $0xd0] sm:$0xff]  ;;  %v912_v52 = vsub.s32 %v90_v41, %v92_v42 }
   0x6   :  { %650 = vmatprep.subr.mxu1 %v84_v5  ;;  %616 = vmatpush3.msra.mxu0 %v36_v6  ;;  %v82_v13 = vld [vmem:[%s1048_s1 + $0x1e0] sm:$0xff]  ;;  %v81_v17 = vld [vmem:[%s1048_s1 + $0x1d8] sm:$0xff]  ;;  %v80_v21 = vld [vmem:[%s1048_s1 + $0x1d0] sm:$0xff] }
   0x7   :  { %651 = vmatpush3.msra.mxu1 %v68_v7  ;;  %617 = vmatprep.subr.mxu0 %v51_v8  ;;  %v34_v14 = vld [vmem:[%s1048_s1 + $0x60] sm:$0xff]  ;;  %v33_v18 = vld [vmem:[%s1048_s1 + $0x58] sm:$0xff]  ;;  %v32_v22 = vld [vmem:[%s1048_s1 + $0x50] sm:$0xff] }
   0x8   :  { %652 = vmatprep.subr.mxu1 %v83_v9  ;;  %v66_v15 = vld [vmem:[%s1048_s1 + $0x160] sm:$0xff]  ;;  %618 = vmatpush3.msra.mxu0 %v35_v10  ;;  %v65_v19 = vld [vmem:[%s1048_s1 + $0x158] sm:$0xff]  ;;  %v64_v23 = vld [vmem:[%s1048_s1 + $0x150] sm:$0xff] }
   0x9   :  { %653 = vmatpush3.msra.mxu1 %v67_v11  ;;  %619 = vmatprep.subr.mxu0 %v50_v12  ;;  %v47_v24 = vld [vmem:[%s1048_s1 + $0xc8] sm:$0xff]  ;;  %v46_v28 = vld [vmem:[%s1048_s1 + $0xc0] sm:$0xff]  ;;  %v45_v35 = vld [vmem:[%s1048_s1 + $0xb8] sm:$0xff] }
   0xa   :  { %654 = vmatprep.subr.mxu1 %v82_v13  ;;  %620 = vmatpush3.msra.mxu0 %v34_v14  ;;  %v79_v25 = vld [vmem:[%s1048_s1 + $0x1c8] sm:$0xff]  ;;  %v78_v29 = vld [vmem:[%s1048_s1 + $0x1c0] sm:$0xff]  ;;  %v77_v36 = vld [vmem:[%s1048_s1 + $0x1b8] sm:$0xff] }
   0xb   :  { %655 = vmatpush3.msra.mxu1 %v66_v15  ;;  %621 = vmatprep.subr.mxu0 %v49_v16  ;;  %v31_v26 = vld [vmem:[%s1048_s1 + $0x48] sm:$0xff]  ;;  %v30_v33 = vld [vmem:[%s1048_s1 + $0x40] sm:$0xff]  ;;  %v29_v37 = vld [vmem:[%s1048_s1 + $0x38] sm:$0xff] }
   0xc   :  { %656 = vmatprep.subr.mxu1 %v81_v17  ;;  %622 = vmatpush3.msra.mxu0 %v33_v18  ;;  %v63_v27 = vld [vmem:[%s1048_s1 + $0x148] sm:$0xff]  ;;  %v62_v34 = vld [vmem:[%s1048_s1 + $0x140] sm:$0xff]  ;;  %v61_v38 = vld [vmem:[%s1048_s1 + $0x138] sm:$0xff] }
   0xd   :  { %657 = vmatpush3.msra.mxu1 %v65_v19  ;;  %623 = vmatprep.subr.mxu0 %v48_v20  ;;  %v44_v39 = vld [vmem:[%s1048_s1 + $0xb0] sm:$0xff]  ;;  %v43_v45 = vld [vmem:[%s1048_s1 + $0xa8] sm:$0xff]  ;;  %v42_v49 = vld [vmem:[%s1048_s1 + $0xa0] sm:$0xff] }
   0xe   :  { %658 = vmatprep.subr.mxu1 %v80_v21  ;;  %624 = vmatpush3.msra.mxu0 %v32_v22  ;;  %v76_v40 = vld [vmem:[%s1048_s1 + $0x1b0] sm:$0xff]  ;;  %v75_v46 = vld [vmem:[%s1048_s1 + $0x1a8] sm:$0xff]  ;;  %v74_v50 = vld [vmem:[%s1048_s1 + $0x1a0] sm:$0xff] }
   0xf   :  { %659 = vmatpush3.msra.mxu1 %v64_v23  ;;  %625 = vmatprep.subr.mxu0 %v47_v24  ;;  %v28_v43 = vld [vmem:[%s1048_s1 + $0x30] sm:$0xff]  ;;  %v27_v47 = vld [vmem:[%s1048_s1 + $0x28] sm:$0xff]  ;;  %v26_v51 = vld [vmem:[%s1048_s1 + $0x20] sm:$0xff] }
  0x10   :  { %660 = vmatprep.subr.mxu1 %v79_v25  ;;  %626 = vmatpush3.msra.mxu0 %v31_v26  ;;  %v60_v44 = vld [vmem:[%s1048_s1 + $0x130] sm:$0xff]  ;;  %v59_v48 = vld [vmem:[%s1048_s1 + $0x128] sm:$0xff]  ;;  %v58_v53 = vld [vmem:[%s1048_s1 + $0x120] sm:$0xff] }
  0x11   :  { %661 = vmatpush3.msra.mxu1 %v63_v27  ;;  %627 = vmatprep.subr.mxu0 %v46_v28  ;;  %v920_v54 = vld [vmem:[%s1047_s0] sm:$0xff] }
  0x12   :  { %662 = vmatprep.subr.mxu1 %v78_v29  ;;  %628 = vmatpush3.msra.mxu0 %v30_v33 }
  0x13   :  { %663 = vmatpush3.msra.mxu1 %v62_v34  ;;  %629 = vmatprep.subr.mxu0 %v45_v35 }
  0x14   :  { %664 = vmatprep.subr.mxu1 %v77_v36  ;;  %630 = vmatpush3.msra.mxu0 %v29_v37 }
  0x15   :  { %665 = vmatpush3.msra.mxu1 %v61_v38  ;;  %631 = vmatprep.subr.mxu0 %v44_v39 }
  0x16   :  { %666 = vmatprep.subr.mxu1 %v76_v40  ;;  %632 = vmatpush3.msra.mxu0 %v28_v43 }
  0x17   :  { %667 = vmatpush3.msra.mxu1 %v60_v44  ;;  %633 = vmatprep.subr.mxu0 %v43_v45 }
  0x18   :  { %668 = vmatprep.subr.mxu1 %v75_v46 }
  0x19   :  { %10 = vsyncpa [#allocation3], 0  ;;  %634 = vmatpush3.msra.mxu0 %v27_v47  ;;  %669 = vmatpush3.msra.mxu1 %v59_v48  ;;  %v41_v55 = vld [vmem:[%s1048_s1 + $0x98] sm:$0xff]  ;;  %v87_v57 = vcombine.high %v920_v54, %v920_v54  ;;  %v40_v60 = vld [vmem:[%s1048_s1 + $0x90] sm:$0xff]  ;;  %v94_v62 = vrot.slane %v920_v54, %v912_v52  ;;  %v738_v12 = vmov 0.0   ;;  %vm739_vm0 = vmmov 0  }
  0x1a   :  { %v73_v56 = vld [vmem:[%s1048_s1 + $0x198] sm:$0xff]  ;;  %635 = vmatprep.subr.mxu0 %v42_v49  ;;  %670 = vmatprep.subr.mxu1 %v74_v50  ;;  %v72_v61 = vld [vmem:[%s1048_s1 + $0x190] sm:$0xff]  ;;  %v39_v2 = vld [vmem:[%s1048_s1 + $0x88] sm:$0xff]  ;;  %vm253_vm1 = vcmask 261120   ;;  %vm329_vm2 = vcmask 64512  }
  0x1b   :  { %v25_v58 = vld [vmem:[%s1048_s1 + $0x18] sm:$0xff]  ;;  %636 = vmatpush3.msra.mxu0 %v26_v51  ;;  %671 = vmatpush3.msra.mxu1 %v58_v53  ;;  %v24_v63 = vld [vmem:[%s1048_s1 + $0x10] sm:$0xff]  ;;  %v101_v1 = vrot.slane %v87_v57, %v912_v52  ;;  %v71_v3 = vld [vmem:[%s1048_s1 + $0x188] sm:$0xff]  ;;  %v102_v8 = vcombine.high %v94_v62, %v94_v62 }
  0x1c   :  { %v57_v59 = vld [vmem:[%s1048_s1 + $0x118] sm:$0xff]  ;;  %637 = vmatprep.subr.mxu0 %v41_v55  ;;  %672 = vmatprep.subr.mxu1 %v73_v56  ;;  %v56_v0 = vld [vmem:[%s1048_s1 + $0x110] sm:$0xff]  ;;  %v23_v4 = vld [vmem:[%s1048_s1 + $0x8] sm:$0xff] }
  0x1d   :  { %638 = vmatpush3.msra.mxu0 %v25_v58  ;;  %673 = vmatpush3.msra.mxu1 %v57_v59  ;;  %v55_v5 = vld [vmem:[%s1048_s1 + $0x108] sm:$0xff]  ;;  %v38_v6 = vld [vmem:[%s1048_s1 + $0x80] sm:$0xff]  ;;  %v103_v10 = vcombine.high %v101_v1, %v101_v1  ;;  %v252_v13 = vld [vmem:[%s1049_s2 + $0x18] sm:$0xff] }
  0x1e   :  { %639 = vmatprep.subr.mxu0 %v40_v60  ;;  %674 = vmatprep.subr.mxu1 %v72_v61  ;;  %v70_v7 = vld [vmem:[%s1048_s1 + $0x180] sm:$0xff]  ;;  %v251_v14 = vld [vmem:[%s1049_s2 + $0x10] sm:$0xff]  ;;  %v250_v15 = vld [vmem:[%s1049_s2 + $0x8] sm:$0xff] }
  0x1f   :  { %640 = vmatpush3.msra.mxu0 %v24_v63  ;;  %675 = vmatpush3.msra.mxu1 %v56_v0  ;;  %v22_v9 = vld [vmem:[%s1048_s1] sm:$0xff]  ;;  %v422_v29 = vld [vmem:[%s1051_s4 + $0x68] sm:$0xff]  ;;  %v424_v30 = vld [vmem:[%s1051_s4 + $0x78] sm:$0xff] }
  0x20   :  { %641 = vmatprep.subr.mxu0 %v39_v2  ;;  %676 = vmatprep.subr.mxu1 %v71_v3  ;;  %v54_v11 = vld [vmem:[%s1048_s1 + $0x100] sm:$0xff]  ;;  %v423_v32 = vld [vmem:[%s1051_s4 + $0x70] sm:$0xff]  ;;  %v418_v33 = vld [vmem:[%s1051_s4 + $0x48] sm:$0xff] }
  0x21   :  { %642 = vmatpush3.msra.mxu0 %v23_v4  ;;  %677 = vmatpush3.msra.mxu1 %v55_v5  ;;  %v249_v16 = vld [vmem:[%s1049_s2] sm:$0xff]  ;;  %v420_v34 = vld [vmem:[%s1051_s4 + $0x58] sm:$0xff]  ;;  %v419_v36 = vld [vmem:[%s1051_s4 + $0x50] sm:$0xff] }
  0x22   :  { %643 = vmatprep.subr.mxu0 %v38_v6  ;;  %678 = vmatprep.subr.mxu1 %v70_v7  ;;  %v328_v17 = vld [vmem:[%s1050_s3] sm:$0xff]  ;;  %v414_v37 = vld [vmem:[%s1051_s4 + $0x28] sm:$0xff]  ;;  %v416_v38 = vld [vmem:[%s1051_s4 + $0x38] sm:$0xff] }
  0x23   :  { %644 = vmatpush3.msra.mxu0 %v22_v9  ;;  %172 = vmatprep.mubr.f32.mxu0 %v102_v8  ;;  %v421_v31 = vld [vmem:[%s1051_s4 + $0x60] sm:$0xff]  ;;  %v415_v40 = vld [vmem:[%s1051_s4 + $0x30] sm:$0xff]  ;;  %v410_v41 = vld [vmem:[%s1051_s4 + $0x8] sm:$0xff] }
  0x24   :  { %679 = vmatpush3.msra.mxu1 %v54_v11  ;;  %242 = vmatprep.mubr.f32.mxu1 %v103_v10  ;;  %v417_v35 = vld [vmem:[%s1051_s4 + $0x40] sm:$0xff]  ;;  %v412_v42 = vld [vmem:[%s1051_s4 + $0x18] sm:$0xff]  ;;  %v411_v44 = vld [vmem:[%s1051_s4 + $0x10] sm:$0xff] }
  0x25   :  { %173 = vmatmul.mubr.f32.vlgmr.msra.gmra.mxu0 %v94_v62  ;;  %243 = vmatmul.mubr.f32.vlgmr.msra.gmra.mxu1 %v101_v1  ;;  %v413_v39 = vld [vmem:[%s1051_s4 + $0x20] sm:$0xff] }
  0x26   :  { %690 = vmatprep.subr.mxu0 %v738_v12  ;;  %701 = vmatprep.subr.mxu1 %v738_v12  ;;  %v409_v43 = vld [vmem:[%s1051_s4] sm:$0xff]  ;;  %s740_s4 = smov [#allocation2]  }
  0x27   :  { %691 = vmatpush3.msra.mxu0 %v252_v13  ;;  %698 = vmatprep.mubr.msk.f32.mxu0 %vm739_vm0, %v738_v12  ;;  %s600_s6 = sshll.u32 %s740_s4, 4  ;;  %s601_s6 = int_to_ptr.vmem [resolvable:$true] %s600_s6 }
  0x28   :  { %692 = vmatprep.subr.mxu0 %v738_v12  ;;  %703 = vmatprep.mubr.msk.f32.mxu1 %vm739_vm0, %v738_v12  ;;  %s715_s7 = scalar_lea.vmem %s601_s6, 128  ;;  %p720_p1 = scmp.lt.s32.totalorder %s601_s6, %s601_s6 }
  0x29   :  { %693 = vmatpush3.msra.mxu0 %v251_v14  ;;  %702 = vmatpush3.msra.mxu1 %v328_v17  ;;  %p716_p0 = scmp.ne.s32.totalorder %s601_s6, %s715_s7  ;;  %p721_p2 = scmp.lt.s32.totalorder %s715_s7, %s715_s7 }
  0x2a   :  { %694 = vmatprep.subr.mxu0 %v738_v12  ;;  %452 = vmatprep.subr.mxu1 %v422_v29 }
  0x2b   :  { %695 = vmatpush3.msra.mxu0 %v250_v15  ;;  %p722_p3 = por %p721_p2, %p720_p1 }
  0x2c   :  { %696 = vmatprep.subr.mxu0 %v738_v12 }
  0x2d   :  { %697 = vmatpush3.msra.mxu0 %v249_v16  ;;  %p723_p4 = pnand %p722_p3, %p716_p0 }
  0x2e   :  { %523 = vmatprep.subr.mxu0 %v424_v30 }
  0xe5   :  { %v645_v18 = vpop.f32.mrf.mxu0  ;;  %v680_v19 = vpop.f32.mrf.mxu1 }
  0xe7   :  { %v646_v20 = vpop.f32.mrf.mxu0  ;;  %v681_v21 = vpop.f32.mrf.mxu1 }
  0xe8   :  { %v647_v22 = vadd.f32 %v646_v20, %v645_v18  ;;  %v682_v23 = vadd.f32 %v681_v21, %v680_v19 }
  0xea   :  { %v245_v24 = vadd.f32 %v682_v23, %v647_v22 }
  0xec   :  { %v248_v25 = vmul.f32 0.0625, %v245_v24 }
  0xee   :  { %699 = vmatmul.mubr.msk.f32.vlgmr.msra.gmra.mxu0 %vm253_vm1, %v248_v25 }
  0xef   :  { %563 = vmatprep.mubr.f32.mxu0 %v738_v12  ;;  %524 = vmatpush1.msra.mxu0 %v423_v32 }
  0xf0   :  { %525 = vmatprep.subr.mxu0 %v420_v34 }
  0xf1   :  { %526 = vmatpush1.msra.mxu0 %v419_v36 }
  0xf2   :  { %527 = vmatprep.subr.mxu0 %v416_v38 }
  0xf3   :  { %528 = vmatpush1.msra.mxu0 %v415_v40 }
  0xf4   :  { %529 = vmatprep.subr.mxu0 %v412_v42 }
  0xf5   :  { %530 = vmatpush1.msra.mxu0 %v411_v44 }
 0x1ae   :  { %v323_v26 = vpop.f32.mrf.mxu0 }
 0x1af   :  { %v327_v27 = vmax.f32 %v323_v26, 0.0 }
 0x1b0   :  { %v700_v28 = vpop.f32.mrf.mxu0 }
 0x1b1   :  { %704 = vmatmul.mubr.msk.f32.vlgmr.msra.gmra.mxu1 %vm329_vm2, %v327_v27 }
 0x1b2   :  { %492 = vmatprep.mubr.f32.mxu1 %v738_v12  ;;  %453 = vmatpush1.msra.mxu1 %v421_v31 }
 0x1b3   :  { %454 = vmatprep.subr.mxu1 %v418_v33 }
 0x1b4   :  { %455 = vmatpush1.msra.mxu1 %v417_v35 }
 0x1b5   :  { %456 = vmatprep.subr.mxu1 %v414_v37 }
 0x1b6   :  { %457 = vmatpush1.msra.mxu1 %v413_v39 }
 0x1b7   :  { %458 = vmatprep.subr.mxu1 %v410_v41 }
 0x1b8   :  { %459 = vmatpush1.msra.mxu1 %v409_v43 }
 0x271   :  { %v399_v45 = vpop.f32.mrf.mxu1 }
 0x272   :  { %v610_v46 = vmul.f32 -1.442695, %v399_v45 }
 0x273   :  { %v705_v47 = vpop.f32.mrf.mxu1 }
 0x274   :  { %711 = vpow2.f32 %v610_v46 }
 0x281   :  { %v712_v48 = vpop.eup %711 }
 0x282   :  { %v406_v49 = vadd.f32 1.0, %v712_v48 }
 0x284   :  { %713 = vrcp.f32 %v406_v49 }
 0x291   :  { %v714_v50 = vpop.eup %713 }
 0x292   :  { %611 = vmatmul.mubr.msk.f32.vlgmr.msra.gmra.mxu1 %vm253_vm1, %v714_v50  ;;  %612 = vmatmul.mubr.msk.f32.vlgmr.msra.gmra.mxu0 %vm253_vm1, %v714_v50 }
 0x352   :  { %v494_v51 = vpop.f32.mrf.mxu1  ;;  %v565_v53 = vpop.f32.mrf.mxu0 }
 0x354   :  { %v496_v55 = vpop.f32.mrf.mxu1  ;;  %v567_v56 = vpop.f32.mrf.mxu0 }
 0x355   :  { %v574_v57 = vcombine.low %v494_v51, %v496_v55  ;;  %v575_v58 = vcombine.low %v565_v53, %v567_v56 }
 0x357   :  { %v582_v59 = vrot.slane %v574_v57, %v912_v52  ;;  %v589_v60 = vrot.slane %v575_v58, %v912_v52 }
 0x359   :  { %v590_v61 = vcombine.low %v582_v59, %v589_v60 }
 0x35b   :  { %v592_v62 = vmul.f32 %v590_v61, %v920_v54 }
 0x35d   :  { %593 = vst [vmem:[#allocation2] sm:$0xff] %v592_v62 }
 0x35e   :  { %726 = shalt.err (!%p723_p4)
}
 0x35f   :  { %603 = dma.vmem_to_hbm [thread:$0]  %s601_s6, 128, %s1052_s5, [#allocation3]  }
 0x360   :  { %735 = dma.done.wait [#allocation3], 128  }
 0x361   :  { %736 = vsyncadd [#allocation3], 4294967168 }
 0x362   :  { %607 = vsyncpa [#allocation3], 1 }

</bundles_post_ra>
